<compile_context>
chip_gen: v6e
topology: v6e:2x2x1
jax: 0.10.0
libtpu: 0.0.40
codegen_flags: <defaults>
</compile_context>

<pallas_src>
import jax
import jax.numpy as jnp
from jax.experimental import pallas as pl
from jax.experimental.pallas import tpu as pltpu


def _mlp_kernel(params_ref, xt_ref, o_ref):
    # params_ref : (9,) f32 in SMEM: [w1_00, w1_01, w1_10, w1_11,
    #                                 b1_0, b1_1, w2_0, w2_1, b2]
    # xt_ref     : (2, TR, 128) f32 VMEM tile — feature axis first, batch
    #              spread over sublanes (TR rows) x lanes (128).
    # o_ref      : (TR, 128) f32 VMEM tile — fully sublane+lane-dense output.
    x0 = xt_ref[0]          # (TR, 128)  feature 0 of every sample in tile
    x1 = xt_ref[1]          # (TR, 128)  feature 1

    w1_00 = params_ref[0]
    w1_01 = params_ref[1]
    w1_10 = params_ref[2]
    w1_11 = params_ref[3]
    b1_0 = params_ref[4]
    b1_1 = params_ref[5]
    w2_0 = params_ref[6]
    w2_1 = params_ref[7]
    b2 = params_ref[8]

    # Hidden layer (2 units): pure VPU broadcast mul/add + ReLU.
    h0 = jnp.maximum(w1_00 * x0 + w1_01 * x1 + b1_0, 0.0)   # (TR, 128)
    h1 = jnp.maximum(w1_10 * x0 + w1_11 * x1 + b1_1, 0.0)   # (TR, 128)

    # Output layer + sigmoid.  exp rides the EUP slot; exact divide keeps
    # bit-level agreement with the reference (approx reciprocal ~1e-4 error).
    z = w2_0 * h0 + w2_1 * h1 + b2                           # (TR, 128)
    o_ref[...] = 1.0 / (1.0 + jnp.exp(-z))


def mlp_forward(x, w1, b1, w2, b2, *, tr=4096):
    """x: (B, 2) float32.  Returns (B,) float32, matching MLP.forward.

    `tr` = rows (sublane-dim) per grid step; must be a multiple of 8.
    Default tr=4096 -> ~12 MiB double-buffered VMEM (fits every generation's
    default scoped-VMEM budget) and ~0.5M samples per step.
    """
    assert tr % 8 == 0, "tr must be a multiple of 8 (sublane granularity)"
    B = x.shape[0]
    LANES = 128

    # Rows of 128 lanes needed to hold the batch, rounded so the grid divides.
    r_needed = pl.cdiv(B, LANES)
    TR = tr if r_needed >= tr else max(8, ((r_needed + 7) // 8) * 8)
    R = ((r_needed + TR - 1) // TR) * TR       # padded row count
    Bp = R * LANES                             # padded batch

    # Single fused relayout: pad batch dim, then view as (2, R, 128).
    # TODO(synk): if callers can supply feature-major (2, B) input, this copy
    # disappears entirely.
    xt_p = jnp.pad(x.astype(jnp.float32), ((0, Bp - B), (0, 0))).T.reshape(
        2, R, LANES)

    # All 9 parameters packed into a single tiny SMEM-resident vector.
    params = jnp.concatenate(
        [jnp.ravel(w1), jnp.ravel(b1), jnp.ravel(w2), jnp.ravel(b2)]
    ).astype(jnp.float32)                                            # (9,)

    grid = (R // TR,)
    out_p = pl.pallas_call(
        _mlp_kernel,
        out_shape=jax.ShapeDtypeStruct((R, LANES), jnp.float32),
        grid=grid,
        in_specs=[
            # Scalars live in SMEM (no VMEM tile, no vector-load slot).
            pl.BlockSpec(memory_space=pltpu.MemorySpace.SMEM),
            # (2, TR, 128): leading dim equals full extent; last two dims are
            # (multiple of 8, 128) -> valid, dense block shape.
            pl.BlockSpec((2, TR, LANES), lambda i: (0, i, 0)),
        ],
        out_specs=pl.BlockSpec((TR, LANES), lambda i: (i, 0)),
        compiler_params=pltpu.CompilerParams(
            dimension_semantics=("parallel",),   # no cross-tile state
        ),
        cost_estimate=pl.CostEstimate(
            flops=10 * Bp,
            transcendentals=Bp,
            bytes_accessed=(2 * Bp + Bp) * 4 + 9 * 4,
        ),
    )(params, xt_p)

    return out_p.reshape(Bp)[:B]   # (B,), matches PyTorch output shape


def mlp_reference(x, w1, b1, w2, b2):
    """Pure-JAX reference implementing the exact PyTorch forward."""
    h = jnp.dot(w1, x.T, precision=jax.lax.Precision.HIGHEST) + b1   # (2, B)
    h = jnp.maximum(h, 0.0)
    z = jnp.dot(w2, h, precision=jax.lax.Precision.HIGHEST) + b2     # (B,)
    return 1.0 / (1.0 + jnp.exp(-z))


if __name__ == "__main__":
    key = jax.random.PRNGKey(0)
    k_w1, k_b1, k_w2, k_b2, k_x1, k_x2 = jax.random.split(key, 6)

    # Deterministic parameter init, mirroring torch.rand (uniform [0,1)).
    w1 = jax.random.uniform(k_w1, (2, 2), dtype=jnp.float32)
    b1 = jax.random.uniform(k_b1, (2, 1), dtype=jnp.float32)
    w2 = jax.random.uniform(k_w2, (2,), dtype=jnp.float32)
    b2 = jax.random.uniform(k_b2, (1,), dtype=jnp.float32)

    # Case 1: batch not a multiple of 128; small tr=8 so the grid takes
    # multiple steps (exercises tiling, lane padding and >=2 "parallel" steps).
    B1 = 2051
    x1 = jax.random.uniform(k_x1, (B1, 2), dtype=jnp.float32)
    out1 = jax.block_until_ready(mlp_forward(x1, w1, b1, w2, b2, tr=8))
    ref1 = mlp_reference(x1, w1, b1, w2, b2)
    assert out1.shape == ref1.shape == (B1,)
    assert jnp.allclose(out1, ref1, atol=1e-6, rtol=1e-6)

    # Case 2: default (large-tile) configuration on a small ragged batch.
    B2 = 259
    x2 = jax.random.uniform(k_x2, (B2, 2), dtype=jnp.float32)
    out2 = jax.block_until_ready(mlp_forward(x2, w1, b1, w2, b2))
    ref2 = mlp_reference(x2, w1, b1, w2, b2)
    assert out2.shape == ref2.shape == (B2,)
    assert jnp.allclose(out2, ref2, atol=1e-6, rtol=1e-6)

    print("KERNEL_OK")
</pallas_src>

<mosaic_0001>
module attributes {stable_mosaic.version = 11 : i64} {
  func.func @_mlp_kernel(%arg0: i32, %arg1: memref<9xf32, #tpu.memory_space<smem>>, %arg2: memref<2x8x128xf32, #tpu.memory_space<vmem>>, %arg3: memref<8x128xf32, #tpu.memory_space<vmem>>) attributes {dimension_semantics = [#tpu.dimension_semantics<parallel>], iteration_bounds = array<i64: 3>, scalar_prefetch = 0 : i64, scratch_operands = 0 : i64, tpu.core_type = #tpu.core_type<tc>, window_params = [{transform_indices = @transform_0, window_bounds = array<i64: 9>}, {transform_indices = @transform_1, window_bounds = array<i64: 2, 8, 128>}, {transform_indices = @transform_2, window_bounds = array<i64: 8, 128>}]} {
    %c0 = arith.constant 0 : index
    %c0_0 = arith.constant 0 : index
    %c0_1 = arith.constant 0 : index
    %0 = vector.load %arg2[%c0, %c0_0, %c0_1] : memref<2x8x128xf32, #tpu.memory_space<vmem>>, vector<1x8x128xf32>
    %1 = vector.shape_cast %0 : vector<1x8x128xf32> to vector<8x128xf32>
    %c1 = arith.constant 1 : index
    %c0_2 = arith.constant 0 : index
    %c0_3 = arith.constant 0 : index
    %2 = vector.load %arg2[%c1, %c0_2, %c0_3] : memref<2x8x128xf32, #tpu.memory_space<vmem>>, vector<1x8x128xf32>
    %3 = vector.shape_cast %2 : vector<1x8x128xf32> to vector<8x128xf32>
    %c0_4 = arith.constant 0 : index
    %4 = memref.load %arg1[%c0_4] : memref<9xf32, #tpu.memory_space<smem>>
    %c1_5 = arith.constant 1 : index
    %5 = memref.load %arg1[%c1_5] : memref<9xf32, #tpu.memory_space<smem>>
    %c2 = arith.constant 2 : index
    %6 = memref.load %arg1[%c2] : memref<9xf32, #tpu.memory_space<smem>>
    %c3 = arith.constant 3 : index
    %7 = memref.load %arg1[%c3] : memref<9xf32, #tpu.memory_space<smem>>
    %c4 = arith.constant 4 : index
    %8 = memref.load %arg1[%c4] : memref<9xf32, #tpu.memory_space<smem>>
    %c5 = arith.constant 5 : index
    %9 = memref.load %arg1[%c5] : memref<9xf32, #tpu.memory_space<smem>>
    %c6 = arith.constant 6 : index
    %10 = memref.load %arg1[%c6] : memref<9xf32, #tpu.memory_space<smem>>
    %c7 = arith.constant 7 : index
    %11 = memref.load %arg1[%c7] : memref<9xf32, #tpu.memory_space<smem>>
    %c8 = arith.constant 8 : index
    %12 = memref.load %arg1[%c8] : memref<9xf32, #tpu.memory_space<smem>>
    %13 = vector.broadcast %4 : f32 to vector<8x128xf32>
    %14 = arith.mulf %13, %1 : vector<8x128xf32>
    %15 = vector.broadcast %5 : f32 to vector<8x128xf32>
    %16 = arith.mulf %15, %3 : vector<8x128xf32>
    %17 = arith.addf %14, %16 : vector<8x128xf32>
    %18 = vector.broadcast %8 : f32 to vector<8x128xf32>
    %19 = arith.addf %17, %18 : vector<8x128xf32>
    %cst = arith.constant 0.000000e+00 : f32
    %20 = vector.broadcast %cst : f32 to vector<8x128xf32>
    %21 = arith.maximumf %19, %20 : vector<8x128xf32>
    %22 = vector.broadcast %6 : f32 to vector<8x128xf32>
    %23 = arith.mulf %22, %1 : vector<8x128xf32>
    %24 = vector.broadcast %7 : f32 to vector<8x128xf32>
    %25 = arith.mulf %24, %3 : vector<8x128xf32>
    %26 = arith.addf %23, %25 : vector<8x128xf32>
    %27 = vector.broadcast %9 : f32 to vector<8x128xf32>
    %28 = arith.addf %26, %27 : vector<8x128xf32>
    %cst_6 = arith.constant 0.000000e+00 : f32
    %29 = vector.broadcast %cst_6 : f32 to vector<8x128xf32>
    %30 = arith.maximumf %28, %29 : vector<8x128xf32>
    %31 = vector.broadcast %10 : f32 to vector<8x128xf32>
    %32 = arith.mulf %31, %21 : vector<8x128xf32>
    %33 = vector.broadcast %11 : f32 to vector<8x128xf32>
    %34 = arith.mulf %33, %30 : vector<8x128xf32>
    %35 = arith.addf %32, %34 : vector<8x128xf32>
    %36 = vector.broadcast %12 : f32 to vector<8x128xf32>
    %37 = arith.addf %35, %36 : vector<8x128xf32>
    %cst_7 = arith.constant 0.000000e+00 : f32
    %38 = vector.broadcast %cst_7 : f32 to vector<8x128xf32>
    %39 = arith.subf %38, %37 : vector<8x128xf32>
    %40 = math.exp %39 : vector<8x128xf32>
    %cst_8 = arith.constant 1.000000e+00 : f32
    %41 = vector.broadcast %cst_8 : f32 to vector<8x128xf32>
    %42 = arith.addf %41, %40 : vector<8x128xf32>
    %cst_9 = arith.constant 1.000000e+00 : f32
    %43 = vector.broadcast %cst_9 : f32 to vector<8x128xf32>
    %44 = arith.divf %43, %42 : vector<8x128xf32>
    %c0_10 = arith.constant 0 : index
    %c0_11 = arith.constant 0 : index
    %45 = vector.load %arg3[%c0_10, %c0_11] : memref<8x128xf32, #tpu.memory_space<vmem>>, vector<8x128xf32>
    tpu.vector_store %arg3[%c0_10, %c0_11], %44 {strides = array<i32>} : memref<8x128xf32, #tpu.memory_space<vmem>>, vector<8x128xf32>,
    return
  }
  func.func @transform_0(%arg0: i32) -> i32 {
    %c0_i32 = arith.constant 0 : i32
    %c0_i32_0 = arith.constant 0 : i32
    return %c0_i32 : i32
  }
  func.func @transform_1(%arg0: i32) -> (i32, i32, i32) {
    %c0_i32 = arith.constant 0 : i32
    %c0_i32_0 = arith.constant 0 : i32
    %c0_i32_1 = arith.constant 0 : i32
    return %c0_i32, %arg0, %c0_i32_0 : i32, i32, i32
  }
  func.func @transform_2(%arg0: i32) -> (i32, i32) {
    %c0_i32 = arith.constant 0 : i32
    %c0_i32_0 = arith.constant 0 : i32
    return %arg0, %c0_i32 : i32, i32
  }
}

</mosaic_0001>

<bundles_post_ra>
// kernel: tpu_custom_call.1
= control target key start
LH: loop header
LB: loop body
LE: loop exit
PB: predicated region body
PF: predicated region fallthrough
CT: control target
= control target key end

     0   :  { %7 = vsyncpa [#allocation5], 0  ;;  %s692_s0 = inlined_call_operand.hbm [shape: f32[9], index: 0, kind: input, shape index: {}]   ;;  %s693_s1 = inlined_call_operand.hbm [shape: f32[2,24,128], index: 1, kind: input, shape index: {}]   ;;  %s694_s2 = inlined_call_operand.hbm [shape: f32[24,128], index: 2, kind: output, shape index: {}]  }
   0x1   :  { %8 = vsyncpa [#allocation3], 0 }
   0x2   :  { %10 = vsyncpa [#allocation3 + $0x1], 0 }
   0x3   :  { %11 = vsyncpa [#allocation4], 0 }
   0x4   :  { %13 = vsyncpa [#allocation4 + $0x1], 0  ;;  %s528_s9 = smov 0   ;;  %s530_s10 = smov 0  }
   0x5   :  { %s532_s11 = smov 0   ;;  %s534_s12 = smov 0  }
   0x6 LB: > { %s549_s13 = sadd.s32 4294967295, %s505_s12   ;;  %s311_s14 = sadd.s32 4294967294, %s505_s12   ;;  %s505_s12 = sphi %s534_s12, %s714_s12   ;;  %s501_s11 = sphi %s532_s11, %s713_s11   ;;  %s497_s10 = sphi %s530_s10, %s712_s10   ;;  %s493_s9 = sphi %s528_s9, %s711_s9  }
   0x7   : > { %s553_s15 = sadd.s32 1, %s505_s12   ;;  %s47_s16 = sadd.s32 1, %s501_s11 }
   0x8   : > { %s44_s17 = ssub.s32 %s505_s12, %s553_s15  ;;  %p54_p0 = scmp.ne.s32.totalorder %s501_s11, %s497_s10 }
   0x9   : > { %p45_p1 = scmp.eq.s32.totalorder %s44_s17, 0  ;;  %p55_p2 = scmp.eq.s32.totalorder %s505_s12, 0 }
   0xa   : > { %p60_p3 = scmp.ne.s32.totalorder %s497_s10, %s493_s9  ;;  %p696_p4 = scmp.eq.s32.totalorder %s549_s13, 0 }
   0xb   : > { %s565_s18 = scalar_select %p45_p1, %s501_s11, %s47_s16  }
   0xc   : > { %p567_p5 = por %p55_p2, %p54_p0  ;;  %p573_p6 = por %p696_p4, %p60_p3 }
   0xd   : > { %p84_p7 = scmp.eq.s32.totalorder %s549_s13, 2  ;;  %p90_p8 = scmp.eq.s32.totalorder %s311_s14, 2 }
   0xe   : > { %s700_s20 = scalar_select %p573_p6, 1, 0 }
   0xf   : > { %p312_p9 = scmp.ge.s32.totalorder %s505_s12, 1  ;;  %p97_p10 = scmp.lt.s32.totalorder %s505_s12, 4 }
  0x10   : > { %p580_p11 = por %p84_p7, %p54_p0  ;;  %p584_p12 = por %p90_p8, %p60_p3 }
  0x11   : > { %p588_p13 = pnand %p312_p9, %p97_p10  ;;  %p355_p2 = scmp.lt.s32.totalorder %s505_s12, 3 }
  0x12   : > { %s701_s21 = scalar_select %p580_p11, 1, 0 }
  0x13   : > { %s702_s22 = scalar_select %p584_p12, 1, 0 }
  0x14   : > { %s703_s23 = scalar_select %p588_p13, 1, 0 }
  0x15   : > { %p342_p1 = pneg %p588_p13  ;;  %s119_s24 = sand.u32 1, %s501_s11  }
  0x16   : > { %s316_s25 = sshll.u32 %s505_s12, 7  ;;  %p601_p0 = pnand %p355_p2, %p567_p5 }
  0x17   : > { %p343_p6 = pnand %p342_p1, %p696_p4  ;;  %s315_s27 = sshll.u32 %s119_s24, 4 }
  0x18   : > { %s507_s28 = smov [#allocation2]   ;;  %s611_s5 = scalar_lea.hbm %s693_s1, %s316_s25 }
  0x19   : > { %345 = dma.hbm_to_smem (!%p343_p6), %s692_s0, 16, %s507_s28, [#allocation5]  }
  0x1a   : > { %s123_s6 = scalar_lea.vmem [#allocation6], %s315_s27  ;;  %s615_s8 = scalar_lea.sflag [#allocation3], %s119_s24 }
  0x1b   : > { %s129_s7 = sshll.u32 %s123_s6, 4  ;;  %s409_s14 = scalar_lea.hbm %s611_s5, 256  ;;  %s613_s7 = int_to_ptr.vmem [resolvable:$true] %s129_s7 }
  0x1c   : > { %p410_p3 = scmp.ne.s32.totalorder %s611_s5, %s409_s14  ;;  %p411_p5 = pneg %p601_p0 }
  0x1d   : > { %s414_s19 = scalar_lea.hbm %s693_s1, 768  ;;  %p415_p8 = scmp.lt.s32.totalorder %s611_s5, %s693_s1 }
  0x1e   : > { %p412_p7 = pnand %p411_p5, %p410_p3  ;;  %p416_p9 = scmp.lt.s32.totalorder %s414_s19, %s409_s14 }
  0x20   : > { %p413_p6 = pneg %p412_p7  ;;  %p417_p10 = por %p416_p9, %p415_p8 }
  0x22   : > { %p418_p1 = pnand %p417_p10, %p413_p6 }
  0x24   : > { %421 = shalt.err (!%p418_p1)
}
  0x25   : > { %s422_s24 = scalar_lea.vmem %s613_s7, 256  ;;  %s508_s27 = smov [#allocation6]  }
  0x26   : > { %p423_p2 = scmp.ne.s32.totalorder %s613_s7, %s422_s24  ;;  %s427_s29 = sshll.u32 %s508_s27, 4  ;;  %s428_s29 = int_to_ptr.vmem [resolvable:$false] %s427_s29 }
  0x27   : > { %s429_s30 = scalar_lea.vmem %s428_s29, 512  ;;  %p430_p7 = scmp.lt.s32.totalorder %s613_s7, %s428_s29 }
  0x28   : > { %p425_p4 = pnand %p423_p2, %p411_p5  ;;  %p431_p12 = scmp.lt.s32.totalorder %s429_s30, %s422_s24 }
  0x2a   : > { %p426_p3 = pneg %p425_p4  ;;  %p432_p11 = por %p431_p12, %p430_p7 }
  0x2c   : > { %p433_p13 = pnand %p432_p11, %p426_p3 }
  0x2e   : > { %436 = shalt.err (!%p433_p13)
}
  0x2f   : > { %s509_s3 = smov 384   ;;  %s510_s4 = smov 128  }
  0x30   : > { %s511_s6 = smov 8   ;;  %p705_p4 = scmp.ne.s32.totalorder %s703_s23, 0 }
  0x31   : > { %349 = dma.hbm_to_vmem [thread:$0]  (!%p601_p0), %s611_s5, 256, %s613_s7, %s615_s8, %s509_s3, %s510_s4, %s511_s6  }
  0x32   : > { %141 = sbr.rel (%p705_p4) target bundleno = 133 (0x85), region = 28  ;;  %p706_p5 = scmp.eq.s32.totalorder (!%p705_p4), %s549_s13, 0 }
  0x37   : > { %480 = dma.done.wait (%p706_p5), [#allocation5], 16   ;;  %p707_p6 = pmov %p706_p5 }
  0x38   : > { %s643_s14 = sand.u32 1, %s497_s10   ;;  %p708_p11 = scmp.ne.s32.totalorder %s700_s20, 0 }
  0x39   : > { %482 = vsyncadd (%p707_p6), [#allocation5], 4294967280  ;;  %s319_s16 = sshll.u32 %s643_s14, 4  ;;  %s148_s17 = scalar_lea.sflag [#allocation3], %s643_s14 }
  0x3a   : > { %s151_s19 = scalar_lea.vmem [#allocation6], %s319_s16 }
  0x3b   : > { %484 = dma.done.wait (%p708_p11), %s148_s17, 256  }
  0x3c   : > { %486 = vsyncadd (%p708_p11), %s148_s17, 4294967040 }
  0x3d   : > { %156 = sfence }
  0x3e   : > { %s176_s23 = sld [smem:[#allocation2]]  ;;  %v173_v0 = vld [vmem:[%s151_s19] sm:$0xff]  ;;  %v321_v1 = vld [vmem:[%s151_s19 + $0x8] sm:$0xff]  ;;  %s320_s27 = sshll.u32 %s643_s14, 3 }
  0x3f   : > { %s322_s26 = sld [smem:[#allocation2 + $0x1]]  ;;  %s172_s29 = scalar_lea.vmem [#allocation7], %s320_s27 }
  0x40   : > { %s323_s5 = sld [smem:[#allocation2 + $0x2]]  ;;  %s229_s30 = sshll.u32 %s172_s29, 4  ;;  %s653_s30 = int_to_ptr.vmem [resolvable:$true] %s229_s30 }
  0x41   : > { %s324_s7 = sld [smem:[#allocation2 + $0x3]]  ;;  %s331_s3 = sshll.u32 %s549_s13, 7 }
  0x42   : > { %s325_s8 = sld [smem:[#allocation2 + $0x4]]  ;;  %s227_s16 = scalar_lea.hbm %s694_s2, %s331_s3 }
  0x43   : > { %s326_s25 = sld [smem:[#allocation2 + $0x5]]  ;;  %s216_s17 = scalar_lea.sflag [#allocation4], %s643_s14 }
  0x44   : > { %s327_s28 = sld [smem:[#allocation2 + $0x6]]  ;;  %v185_v2 = vstv %s176_s23  ;;  %s437_s19 = scalar_lea.vmem %s653_s30, 128 }
  0x45   : > { %s328_s24 = sld [smem:[#allocation2 + $0x7]]  ;;  %v186_v3 = vmul.f32 %v185_v2, %v173_v0  ;;  %v187_v4 = vstv %s322_s26  ;;  %p438_p12 = scmp.ne.s32.totalorder %s653_s30, %s437_s19 }
  0x46   : > { %v188_v5 = vmul.f32 %v321_v1, %v187_v4  ;;  %v193_v6 = vstv %s323_s5  ;;  %s329_s20 = sld [smem:[#allocation2 + $0x8]]  ;;  %p709_p13 = scmp.ne.s32.totalorder %s701_s21, 0 }
  0x47   : > { %v194_v7 = vmul.f32 %v193_v6, %v173_v0  ;;  %v195_v8 = vstv %s324_s7  ;;  %s512_s23 = smov [#allocation7]  }
  0x48   : > { %v189_v9 = vadd.f32 %v188_v5, %v186_v3  ;;  %v190_v10 = vstv %s325_s8  ;;  %v196_v11 = vmul.f32 %v321_v1, %v195_v8  ;;  %p439_p0 = pnand %p438_p12, %p709_p13  ;;  %s441_s26 = sshll.u32 %s512_s23, 4  ;;  %s442_s26 = int_to_ptr.vmem [resolvable:$false] %s441_s26 }
  0x49   : > { %v198_v12 = vstv %s326_s25  ;;  %s443_s13 = scalar_lea.vmem %s442_s26, 256  ;;  %p444_p9 = scmp.lt.s32.totalorder %s653_s30, %s442_s26 }
  0x4a   : > { %v191_v13 = vadd.f32 %v190_v10, %v189_v9  ;;  %v197_v14 = vadd.f32 %v196_v11, %v194_v7  ;;  %v201_v15 = vstv %s327_s28  ;;  %p440_p8 = pneg %p439_p0  ;;  %p445_p10 = scmp.lt.s32.totalorder %s443_s13, %s437_s19 }
  0x4b   : > { %v203_v18 = vstv %s328_s24 }
  0x4c   : > { %v192_v16 = vmax.f32 %v191_v13, 0.0  ;;  %v199_v17 = vadd.f32 %v198_v12, %v197_v14  ;;  %v206_v22 = vstv %s329_s20  ;;  %p446_p1 = por %p445_p10, %p444_p9 }
  0x4e   : > { %v200_v19 = vmax.f32 %v199_v17, 0.0  ;;  %v202_v20 = vmul.f32 %v201_v15, %v192_v16  ;;  %p447_p2 = pnand %p446_p1, %p440_p8 }
  0x50   : > { %v204_v21 = vmul.f32 %v203_v18, %v200_v19 }
  0x52   : > { %v205_v23 = vadd.f32 %v204_v21, %v202_v20 }
  0x54   : > { %v207_v24 = vadd.f32 %v206_v22, %v205_v23 }
  0x56   : > { %v208_v25 = vsub.f32 0.0, %v207_v24 }
  0x58   : > { %v209_v26 = vmul.f32 1.442695, %v208_v25 }
  0x5a   : > { %394 = vpow2.f32 %v209_v26 }
  0x67   : > { %v395_v27 = vpop.eup %394 }
  0x68   : > { %v211_v28 = vadd.f32 1.0, %v395_v27 }
  0x6a   : > { %396 = vrcp.f32 %v211_v28 }
  0x77   : > { %v397_v29 = vpop.eup %396 }
  0x78   : > { %214 = vst [vmem:[%s172_s29] sm:$0xff] %v397_v29 }
  0x79   : > { %450 = shalt.err (!%p447_p2)
}
  0x7a   : > { %s451_s5 = scalar_lea.hbm %s227_s16, 128  ;;  %s455_s8 = scalar_lea.hbm %s694_s2, 384 }
  0x7b   : > { %p452_p3 = scmp.ne.s32.totalorder %s227_s16, %s451_s5  ;;  %p456_p5 = scmp.lt.s32.totalorder %s227_s16, %s694_s2 }
  0x7c   : > { %p457_p6 = scmp.lt.s32.totalorder %s455_s8, %s451_s5 }
  0x7d   : > { %p453_p7 = pnand %p452_p3, %p709_p13 }
  0x7e   : > { %p458_p11 = por %p457_p6, %p456_p5 }
  0x7f   : > { %p454_p4 = pneg %p453_p7 }
  0x81   : > { %p459_p12 = pnand %p458_p11, %p454_p4 }
  0x83   : > { %462 = shalt.err (!%p459_p12)
}
  0x84   : > { %340 = dma.vmem_to_hbm [thread:$0]  (%p709_p13), %s653_s30, 128, %s227_s16, %s216_s17  }
  0x85 PF: > { %p357_p0 = scmp.ge.s32.totalorder %s505_s12, 2  ;;  %s241_s24 = sand.u32 1, %s493_s9  }
  0x86   : > { %p710_p8 = scmp.ne.s32.totalorder %s702_s22, 0  ;;  %s242_s20 = scalar_lea.sflag [#allocation4], %s241_s24 }
  0x88   : > { %p351_p9 = pnand %p357_p0, %p710_p8 }
  0x8a   : > { %p352_p10 = pneg %p351_p9 }
  0x8c   : > { %488 = dma.done.wait (%p352_p10), %s242_s20, 128  }
  0x8d   : > { %490 = vsyncadd (%p352_p10), %s242_s20, 4294967168  ;;  %p16_p1 = scmp.ge.s32.totalorder %s553_s15, 5   ;;  %s711_s9 = smov %s497_s10 }
  0x8e   : > { %s712_s10 = smov %s501_s11  ;;  %s713_s11 = smov %s565_s18 }
  0x8f   : > { %s714_s12 = smov %s553_s15  ;;  %18 = sbr.rel (!%p16_p1) target bundleno = 6 (0x6), region = 79 }
  0x94   :  { %247 = vsyncpa [#allocation3], 1 }
  0x95   :  { %249 = vsyncpa [#allocation3 + $0x1], 1 }
  0x96   :  { %250 = vsyncpa [#allocation4], 1 }
  0x97   :  { %252 = vsyncpa [#allocation4 + $0x1], 1 }
  0x98   :  { %253 = vsyncpa [#allocation5], 1 }
  0x99   :  { %255 = vsyncpa [#allocation5 + $0x1], 1 }

</bundles_post_ra>
